<compile_context>
chip_gen: v7x
topology: tpu7x:2x2x1
jax: 0.10.0
libtpu: 0.0.40
codegen_flags: <defaults>
</compile_context>

<pallas_src>
import functools

import jax
import jax.numpy as jnp
from jax.experimental import pallas as pl
from jax.experimental.pallas import tpu as pltpu


# ------------------------------ sizing helpers -------------------------------

_FUSED_VMEM_CAP = 40 << 20       # take the fused path if it needs <= this much VMEM
_VMEM_LIMIT_MAX = 48 << 20       # keep >= 16 MiB headroom under v7x's 64 MiB physical
_TWO_PASS_TILE_BUDGET = 4 << 20  # HW-tile byte target for the fallback passes


def _round_up(a, b):
    return (a + b - 1) // b * b


def _vmem_limit(estimate_bytes):
    """Scoped-VMEM request: at least v5e's 16 MiB default, at most 48 MiB."""
    return int(min(max(estimate_bytes + (2 << 20), 16 << 20), _VMEM_LIMIT_MAX))


def _pick_hw_tile(hw, c, itemsize, budget_bytes):
    """Largest HW tile (full row, or a multiple of 128) within the byte budget."""
    max_elems = max(budget_bytes // (c * itemsize), 128)
    if hw <= max_elems:
        return hw
    t_max = max((max_elems // 128) * 128, 128)
    for cand in range(t_max, 127, -128):          # prefer an exact divisor (no tail)
        if hw % cand == 0:
            return cand
    return t_max


# -------------------------------- kernels ------------------------------------


def _fc_sigmoid(pooled, w1t, w2):
    """pooled (C,1) -> sigmoid(W2 @ relu(W1 @ pooled)) as (C,1).  f32 on VPU/XLU."""
    h = jnp.maximum(jnp.sum(pooled * w1t, axis=0, keepdims=True), 0.0)    # (1, Cr)
    return jax.nn.sigmoid(jnp.sum(w2 * h, axis=1, keepdims=True))         # (C, 1)


def _se_fused_kernel(x_ref, w1t_ref, w2_ref, o_ref, *, inv_hw):
    """Grid (N,).  Whole (C, HW) sample resident: pool -> FCs -> scale in place."""
    x = x_ref[0]                                                           # (C, HW)
    pooled = jnp.sum(x.astype(jnp.float32), axis=-1, keepdims=True) * inv_hw
    y = _fc_sigmoid(pooled, w1t_ref[...], w2_ref[...])                     # (C, 1) f32
    # Multiply in x's dtype (bf16 stays bf16 on v6e/v7x VPUs; exact for f32).
    o_ref[...] = (x * y.astype(x.dtype))[None].astype(o_ref.dtype)


def _se_pool_fc_kernel(x_ref, w1t_ref, w2_ref, y_ref, acc_ref, *,
                       inv_hw, hw, thw, ragged):
    """Grid (N, J).  Accumulate channel sums over HW tiles; on the last tile run
    mean -> FC1 -> ReLU -> FC2 -> sigmoid and emit the (1, C, 1) scale vector."""
    j = pl.program_id(1)

    @pl.when(j == 0)
    def _():
        acc_ref[...] = jnp.zeros_like(acc_ref)

    x = x_ref[0].astype(jnp.float32)                                       # (C, thw)
    if ragged:
        # Tail tile is padded with unspecified values by the block read: mask it.
        lane = jax.lax.broadcasted_iota(jnp.int32, x.shape, 1)
        x = jnp.where(lane < (hw - j * thw), x, 0.0)
    acc_ref[...] += jnp.sum(x, axis=-1, keepdims=True)                     # (C, 1)

    @pl.when(j == pl.num_programs(1) - 1)
    def _():
        y = _fc_sigmoid(acc_ref[...] * inv_hw, w1t_ref[...], w2_ref[...])  # (C, 1)
        y_ref[...] = y[None].astype(y_ref.dtype)                           # (1, C, 1)


def _se_scale_kernel(x_ref, y_ref, o_ref):
    """Grid (N, J): per-channel scale, broadcast over the lane (HW) axis.
    Ragged tail columns are dropped by the masked final store."""
    x = x_ref[...]                                                         # (1, C, thw)
    o_ref[...] = (x * y_ref[...].astype(x.dtype)).astype(o_ref.dtype)


# -------------------------------- wrapper -------------------------------------


def se_layer(x, w1, w2, *, force_two_pass=False, hw_tile_budget_bytes=None):
    """SELayer forward.

    x:  (N, C, H, W)  -- PyTorch NCHW activation.
    w1: (C//r, C)     -- torch nn.Linear(channel, channel//r, bias=False).weight
    w2: (C, C//r)     -- torch nn.Linear(channel//r, channel, bias=False).weight
    Returns x * sigmoid(W2 @ relu(W1 @ avgpool(x))) with torch semantics.
    """
    N, C, H, W = x.shape
    Cr = w1.shape[0]
    assert Cr >= 1 and w1.shape == (Cr, C) and w2.shape == (C, Cr)

    HW = H * W
    itemsize = x.dtype.itemsize
    x3 = x.reshape(N, C, HW)                               # free NCHW view
    w1t = w1.T.astype(jnp.float32)                         # (C, Cr)
    w2f = w2.astype(jnp.float32)                           # (C, Cr)
    inv_hw = 1.0 / float(HW)

    # VMEM footprint estimates use lane/sublane-padded buffer sizes.
    c_pad = _round_up(C, 8)
    cr_pad = _round_up(Cr, 128)
    w_bytes = 2 * 2 * c_pad * cr_pad * 4                   # both weights, double-buffered

    # ------------- fused single pass: x read once, written once ---------------
    slab = c_pad * _round_up(HW, 128) * itemsize           # one (1, C, HW) buffer
    fused_need = 4 * slab + w_bytes                        # 2x(in + out) + weights
    if not force_two_pass and fused_need <= _FUSED_VMEM_CAP:
        out = pl.pallas_call(
            functools.partial(_se_fused_kernel, inv_hw=inv_hw),
            out_shape=jax.ShapeDtypeStruct((N, C, HW), x.dtype),
            grid=(N,),
            in_specs=[
                pl.BlockSpec((1, C, HW), lambda n: (n, 0, 0)),
                pl.BlockSpec((C, Cr), lambda n: (0, 0)),
                pl.BlockSpec((C, Cr), lambda n: (0, 0)),
            ],
            out_specs=pl.BlockSpec((1, C, HW), lambda n: (n, 0, 0)),
            compiler_params=pltpu.CompilerParams(
                dimension_semantics=("parallel",),
                vmem_limit_bytes=_vmem_limit(fused_need)),
        )(x3, w1t, w2f)
        return out.reshape(N, C, H, W)

    # ------------- two-pass fallback for very large per-sample slabs ----------
    budget = hw_tile_budget_bytes or _TWO_PASS_TILE_BUDGET
    thw = _pick_hw_tile(HW, C, itemsize, budget)
    n_hw = pl.cdiv(HW, thw)
    ragged = (HW % thw) != 0
    tile_bytes = c_pad * thw * itemsize

    # Pass 1: global average pool + the two tiny FCs -> per-(n, c) scale vector.
    # TODO(synk): on v7x with N == 1 this pass occupies a single TensorCore; a
    # split-HW partial-sum grid axis would engage both cores for that case.
    p1_need = 3 * tile_bytes + w_bytes + 6 * c_pad * 128 * 4
    y = pl.pallas_call(
        functools.partial(_se_pool_fc_kernel, inv_hw=inv_hw,
                          hw=HW, thw=thw, ragged=ragged),
        out_shape=jax.ShapeDtypeStruct((N, C, 1), jnp.float32),
        grid=(N, n_hw),
        in_specs=[
            # Buffered(3): the FC epilogue on the last tile of sample n does not
            # stall the prefetch of sample n+1's first tile.
            pl.BlockSpec((1, C, thw), lambda n, j: (n, 0, j),
                         pipeline_mode=pl.Buffered(3)),
            pl.BlockSpec((C, Cr), lambda n, j: (0, 0)),
            pl.BlockSpec((C, Cr), lambda n, j: (0, 0)),
        ],
        out_specs=pl.BlockSpec((1, C, 1), lambda n, j: (n, 0, 0)),
        scratch_shapes=[pltpu.VMEM((C, 1), jnp.float32)],
        compiler_params=pltpu.CompilerParams(
            dimension_semantics=("parallel", "arbitrary"),
            vmem_limit_bytes=_vmem_limit(p1_need)),
    )(x3, w1t, w2f)

    # Pass 2: channel-wise rescale of x (lane-dense (1, C, thw) blocks).
    p2_need = 4 * tile_bytes + 4 * c_pad * 128 * 4
    out = pl.pallas_call(
        _se_scale_kernel,
        out_shape=jax.ShapeDtypeStruct((N, C, HW), x.dtype),
        grid=(N, n_hw),
        in_specs=[
            pl.BlockSpec((1, C, thw), lambda n, j: (n, 0, j)),
            pl.BlockSpec((1, C, 1), lambda n, j: (n, 0, 0)),
        ],
        out_specs=pl.BlockSpec((1, C, thw), lambda n, j: (n, 0, j)),
        compiler_params=pltpu.CompilerParams(
            dimension_semantics=("parallel", "parallel"),
            vmem_limit_bytes=_vmem_limit(p2_need)),
    )(x3, y)
    return out.reshape(N, C, H, W)


# ----------------------------- pure-JAX reference -----------------------------


def se_ref(x, w1, w2):
    p = jnp.mean(x.astype(jnp.float32), axis=(2, 3))       # (N, C)
    h = jnp.maximum(p @ w1.T, 0.0)                         # (N, Cr)
    y = jax.nn.sigmoid(h @ w2.T)                           # (N, C)
    return x.astype(jnp.float32) * y[:, :, None, None]


# ----------------------------------- main --------------------------------------

if __name__ == "__main__":
    key = jax.random.PRNGKey(0)
    kx, k1, k2, kx2 = jax.random.split(key, 4)

    # SELayer(channel=64, reduction=16) -> hidden dim 4.
    N, C, reduction = 2, 64, 16
    Cr = C // reduction
    w1 = jax.random.normal(k1, (Cr, C), jnp.float32) * (1.0 / C ** 0.5)
    w2 = jax.random.normal(k2, (C, Cr), jnp.float32) * (1.0 / Cr ** 0.5)

    fused = jax.jit(se_layer)
    two_pass = jax.jit(functools.partial(se_layer, force_two_pass=True,
                                         hw_tile_budget_bytes=32 * 1024))

    def check(out, ref, tol):
        jax.block_until_ready(out)
        assert out.shape == ref.shape, (out.shape, ref.shape)
        assert bool(jnp.all(jnp.isfinite(out)))
        err = float(jnp.max(jnp.abs(out.astype(jnp.float32) - ref)))
        assert err < tol, f"mismatch vs reference: {err}"

    # Aligned spatial (16x16): fused fast path + forced two-pass (2 HW tiles).
    xa = jax.random.normal(kx, (N, C, 16, 16), jnp.float32)
    ref_a = se_ref(xa, w1, w2)
    check(fused(xa, w1, w2), ref_a, 1e-4)
    check(two_pass(xa, w1, w2), ref_a, 1e-4)

    # Ragged spatial (13x13 -> HW=169): fused path + two-pass ragged-tail masking.
    xb = jax.random.normal(kx2, (N, C, 13, 13), jnp.float32)
    ref_b = se_ref(xb, w1, w2)
    check(fused(xb, w1, w2), ref_b, 1e-4)
    check(two_pass(xb, w1, w2), ref_b, 1e-4)

    # bf16 activations: scale multiply stays in bf16 (native on v6e/v7x VPUs).
    xc = xa.astype(jnp.bfloat16)
    check(fused(xc, w1, w2), se_ref(xc, w1, w2), 8e-2)

    print("KERNEL_OK")
</pallas_src>

<mosaic_0001>
module attributes {stable_mosaic.version = 11 : i64} {
  func.func @_se_fused_kernel(%arg0: i32, %arg1: memref<1x64x256xf32, #tpu.memory_space<vmem>>, %arg2: memref<64x4xf32, #tpu.memory_space<vmem>>, %arg3: memref<64x4xf32, #tpu.memory_space<vmem>>, %arg4: memref<1x64x256xf32, #tpu.memory_space<vmem>>) attributes {dimension_semantics = [#tpu.dimension_semantics<parallel>], iteration_bounds = array<i64: 2>, scalar_prefetch = 0 : i64, scratch_operands = 0 : i64, tpu.core_type = #tpu.core_type<tc>, window_params = [{transform_indices = @transform_0, window_bounds = array<i64: 1, 64, 256>}, {pipeline_mode = #tpu.pipeline_mode<synchronous>, transform_indices = @transform_1, window_bounds = array<i64: 64, 4>}, {pipeline_mode = #tpu.pipeline_mode<synchronous>, transform_indices = @transform_2, window_bounds = array<i64: 64, 4>}, {transform_indices = @transform_3, window_bounds = array<i64: 1, 64, 256>}]} {
    %c0 = arith.constant 0 : index
    %c0_0 = arith.constant 0 : index
    %c0_1 = arith.constant 0 : index
    %0 = vector.load %arg1[%c0, %c0_0, %c0_1] : memref<1x64x256xf32, #tpu.memory_space<vmem>>, vector<1x64x256xf32>
    %1 = vector.shape_cast %0 : vector<1x64x256xf32> to vector<64x256xf32>
    %cst = arith.constant dense<0.000000e+00> : vector<64xf32>
    %2 = vector.multi_reduction <add>, %1, %cst [1] : vector<64x256xf32> to vector<64xf32>
    %3 = vector.shape_cast %2 : vector<64xf32> to vector<64x1xf32>
    %cst_2 = arith.constant 3.906250e-03 : f32
    %4 = vector.broadcast %cst_2 : f32 to vector<64x1xf32>
    %5 = arith.mulf %3, %4 : vector<64x1xf32>
    %c0_3 = arith.constant 0 : index
    %c0_4 = arith.constant 0 : index
    %6 = vector.load %arg2[%c0_3, %c0_4] : memref<64x4xf32, #tpu.memory_space<vmem>>, vector<64x4xf32>
    %c0_5 = arith.constant 0 : index
    %c0_6 = arith.constant 0 : index
    %7 = vector.load %arg3[%c0_5, %c0_6] : memref<64x4xf32, #tpu.memory_space<vmem>>, vector<64x4xf32>
    %8 = vector.broadcast %5 : vector<64x1xf32> to vector<64x4xf32>
    %9 = arith.mulf %8, %6 : vector<64x4xf32>
    %cst_7 = arith.constant dense<0.000000e+00> : vector<4xf32>
    %10 = vector.multi_reduction <add>, %9, %cst_7 [0] : vector<64x4xf32> to vector<4xf32>
    %11 = vector.shape_cast %10 : vector<4xf32> to vector<1x4xf32>
    %cst_8 = arith.constant 0.000000e+00 : f32
    %12 = vector.broadcast %cst_8 : f32 to vector<1x4xf32>
    %13 = arith.maximumf %11, %12 : vector<1x4xf32>
    %14 = vector.broadcast %13 : vector<1x4xf32> to vector<64x4xf32>
    %15 = arith.mulf %7, %14 : vector<64x4xf32>
    %cst_9 = arith.constant dense<0.000000e+00> : vector<64xf32>
    %16 = vector.multi_reduction <add>, %15, %cst_9 [1] : vector<64x4xf32> to vector<64xf32>
    %17 = vector.shape_cast %16 : vector<64xf32> to vector<64x1xf32>
    %18 = arith.negf %17 : vector<64x1xf32>
    %19 = math.exp %18 : vector<64x1xf32>
    %cst_10 = arith.constant 1.000000e+00 : f32
    %20 = vector.broadcast %cst_10 : f32 to vector<64x1xf32>
    %21 = arith.addf %20, %19 : vector<64x1xf32>
    %22 = arith.divf %20, %21 : vector<64x1xf32>
    %23 = vector.broadcast %22 : vector<64x1xf32> to vector<64x256xf32>
    %24 = arith.mulf %1, %23 : vector<64x256xf32>
    %25 = vector.shape_cast %24 : vector<64x256xf32> to vector<1x64x256xf32>
    %c0_11 = arith.constant 0 : index
    %c0_12 = arith.constant 0 : index
    %c0_13 = arith.constant 0 : index
    %26 = vector.load %arg4[%c0_11, %c0_12, %c0_13] : memref<1x64x256xf32, #tpu.memory_space<vmem>>, vector<1x64x256xf32>
    tpu.vector_store %arg4[%c0_11, %c0_12, %c0_13], %25 {strides = array<i32>} : memref<1x64x256xf32, #tpu.memory_space<vmem>>, vector<1x64x256xf32>,
    return
  }
  func.func @transform_0(%arg0: i32) -> (i32, i32, i32) {
    %c0_i32 = arith.constant 0 : i32
    %c0_i32_0 = arith.constant 0 : i32
    %c0_i32_1 = arith.constant 0 : i32
    return %arg0, %c0_i32, %c0_i32_0 : i32, i32, i32
  }
  func.func @transform_1(%arg0: i32) -> (i32, i32) {
    %c0_i32 = arith.constant 0 : i32
    %c0_i32_0 = arith.constant 0 : i32
    %c0_i32_1 = arith.constant 0 : i32
    return %c0_i32, %c0_i32_0 : i32, i32
  }
  func.func @transform_2(%arg0: i32) -> (i32, i32) {
    %c0_i32 = arith.constant 0 : i32
    %c0_i32_0 = arith.constant 0 : i32
    %c0_i32_1 = arith.constant 0 : i32
    return %c0_i32, %c0_i32_0 : i32, i32
  }
  func.func @transform_3(%arg0: i32) -> (i32, i32, i32) {
    %c0_i32 = arith.constant 0 : i32
    %c0_i32_0 = arith.constant 0 : i32
    %c0_i32_1 = arith.constant 0 : i32
    return %arg0, %c0_i32, %c0_i32_0 : i32, i32, i32
  }
}

</mosaic_0001>

<bundles_post_ra>
// kernel: se_layer.1
= control target key start
LH: loop header
LB: loop body
LE: loop exit
PB: predicated region body
PF: predicated region fallthrough
CT: control target
= control target key end

     0   :  { %s522_s12 = smov 0   ;;  %s692_s0 = inlined_call_operand.vmem [shape: f32[2,64,256], index: 0, kind: input, shape index: {}]   ;;  %s693_s1 = inlined_call_operand.vmem [shape: f32[64,4], index: 1, kind: input, shape index: {}]   ;;  %s694_s2 = inlined_call_operand.vmem [shape: f32[64,4], index: 2, kind: input, shape index: {}]   ;;  %s695_s3 = inlined_call_operand.vmem [shape: f32[2,64,256], index: 3, kind: output, shape index: {}]  }
   0x1 LB: > { %s433_s13 = sadd.s32 4294967295, %s500_s12   ;;  %p437_p0 = scmp.ge.s32.totalorder %s500_s12, 1  ;;  %s500_s12 = sphi %s522_s12, %s13_s12  }
   0x2   : > { %p137_p1 = scmp.lt.s32.totalorder %s500_s12, 3 }
   0x4   : > { %p138_p2 = pnand %p437_p0, %p137_p1 }
   0x5   : > { %p161_p3 = scmp.lt.s32.totalorder (!%p138_p2), %s433_s13, 1  ;;  %v219_v27 = vld [vmem:[%s693_s1] sm:$0xff] (!%p138_p2)  ;;  %v221_v29 = vld [vmem:[%s693_s1 + $0x10] sm:$0xff] (!%p138_p2)  ;;  %v220_v30 = vld [vmem:[%s693_s1 + $0x8] sm:$0xff] (!%p138_p2)  ;;  %vm243_vm0 = vcmask (!%p138_p2), 31744  }
   0x6   : > { %141 = sbr.rel (%p138_p2) target bundleno = 387 (0x183), region = 32  ;;  %v222_v34 = vld [vmem:[%s693_s1 + $0x18] sm:$0xff] (!%p138_p2)  ;;  %v223_v40 = vld [vmem:[%s693_s1 + $0x20] sm:$0xff] (!%p138_p2)  ;;  %v224_v45 = vld [vmem:[%s693_s1 + $0x28] sm:$0xff] (!%p138_p2) }
   0x7   : > { %v225_v54 = vld [vmem:[%s693_s1 + $0x30] sm:$0xff] (!%p138_p2)  ;;  %v226_v58 = vld [vmem:[%s693_s1 + $0x38] sm:$0xff] (!%p138_p2) }
   0xd   : > { %s697_s13 = smov (!%p161_p3, %s433_s13), 1 }
   0xe   : > { %s452_s14 = sshll.u32 %s697_s13, 7 }
   0xf   : > { %s165_s17 = scalar_lea.vmem %s692_s0, %s452_s14  ;;  %s655_s28 = scalar_lea.vmem %s695_s3, %s452_s14 }
  0x10   : > { %v538_v0 = vld [vmem:[%s165_s17] sm:$0xff]  ;;  %v540_v1 = vld [vmem:[%s165_s17 + $0x8] sm:$0xff]  ;;  %v548_v5 = vld [vmem:[%s165_s17 + $0x10] sm:$0xff] }
  0x11   : > { %v542_v2 = vld [vmem:[%s165_s17 + $0x20] sm:$0xff]  ;;  %v187_v3 = vadd.f32 %v540_v1, %v538_v0  ;;  %v546_v4 = vld [vmem:[%s165_s17 + $0x28] sm:$0xff]  ;;  %v550_v6 = vld [vmem:[%s165_s17 + $0x18] sm:$0xff] }
  0x12   : > { %v193_v7 = vadd.f32 %v546_v4, %v542_v2  ;;  %v554_v8 = vld [vmem:[%s165_s17 + $0x30] sm:$0xff]  ;;  %v556_v9 = vld [vmem:[%s165_s17 + $0x38] sm:$0xff]  ;;  %v190_v10 = vadd.f32 %v550_v6, %v548_v5  ;;  %v562_v12 = vld [vmem:[%s165_s17 + $0x40] sm:$0xff] }
  0x13   : > { %188 = vadd.xlane.f32.xlu0 %v187_v3  ;;  %v196_v11 = vadd.f32 %v556_v9, %v554_v8  ;;  %v564_v13 = vld [vmem:[%s165_s17 + $0x48] sm:$0xff]  ;;  %v566_v14 = vld [vmem:[%s165_s17 + $0x50] sm:$0xff]  ;;  %v568_v15 = vld [vmem:[%s165_s17 + $0x58] sm:$0xff] }
  0x14   : > { %194 = vadd.xlane.f32.xlu1 %v193_v7  ;;  %v199_v16 = vadd.f32 %v564_v13, %v562_v12  ;;  %v202_v17 = vadd.f32 %v568_v15, %v566_v14  ;;  %v574_v18 = vld [vmem:[%s165_s17 + $0x60] sm:$0xff]  ;;  %v576_v19 = vld [vmem:[%s165_s17 + $0x68] sm:$0xff]  ;;  %v578_v20 = vld [vmem:[%s165_s17 + $0x70] sm:$0xff] }
  0x15   : > { %v580_v21 = vld [vmem:[%s165_s17 + $0x78] sm:$0xff]  ;;  %v205_v22 = vadd.f32 %v576_v19, %v574_v18 }
  0x16   : > { %v208_v23 = vadd.f32 %v580_v21, %v578_v20 }
  0x17   : > { %191 = vadd.xlane.f32.xlu0 %v190_v10 }
  0x18   : > { %197 = vadd.xlane.f32.xlu1 %v196_v11 }
  0x1b   : > { %200 = vadd.xlane.f32.xlu0 %v199_v16 }
  0x1c   : > { %203 = vadd.xlane.f32.xlu1 %v202_v17 }
  0x1f   : > { %206 = vadd.xlane.f32.xlu0 %v205_v22 }
  0x20   : > { %209 = vadd.xlane.f32.xlu1 %v208_v23 }
  0xa0   : > { %v189_v24 = vpop.xlane.xlu0 %188 }
  0xa1   : > { %v211_v25 = vmul.f32 0.00390625, %v189_v24  ;;  %v195_v26 = vpop.xlane.xlu1 %194 }
  0xa2   : > { %v213_v28 = vmul.f32 0.00390625, %v195_v26 }
  0xa3   : > { %v235_v32 = vmul.f32 %v219_v27, %v211_v25 }
  0xa4   : > { %v192_v31 = vpop.xlane.xlu0 %191  ;;  %v237_v37 = vmul.f32 %v221_v29, %v213_v28  ;;  %v228_v29 = vld [vmem:[%s694_s2 + $0x8] sm:$0xff] }
  0xa5   : > { %v212_v33 = vmul.f32 0.00390625, %v192_v31  ;;  %v198_v35 = vpop.xlane.xlu1 %197  ;;  %v244_v42 = vsel %vm243_vm0, %v235_v32, 0.0  ;;  %v230_v32 = vld [vmem:[%s694_s2 + $0x18] sm:$0xff] }
  0xa6   : > { %v214_v36 = vmul.f32 0.00390625, %v198_v35  ;;  %v247_v49 = vsel %vm243_vm0, %v237_v37, 0.0 }
  0xa7   : > { %v236_v38 = vmul.f32 %v220_v30, %v212_v33  ;;  %v227_v30 = vld [vmem:[%s694_s2] sm:$0xff]  ;;  %v229_v33 = vld [vmem:[%s694_s2 + $0x10] sm:$0xff] }
  0xa8   : > { %v238_v39 = vmul.f32 %v222_v34, %v214_v36  ;;  %v201_v41 = vpop.xlane.xlu0 %200 }
  0xa9   : > { %v245_v43 = vsel %vm243_vm0, %v236_v38, 0.0  ;;  %v215_v44 = vmul.f32 0.00390625, %v201_v41  ;;  %v204_v46 = vpop.xlane.xlu1 %203  ;;  %v231_v41 = vld [vmem:[%s694_s2 + $0x20] sm:$0xff] }
  0xaa   : > { %v246_v47 = vadd.f32 %v245_v43, %v244_v42  ;;  %v216_v48 = vmul.f32 0.00390625, %v204_v46  ;;  %v249_v50 = vsel %vm243_vm0, %v238_v39, 0.0  ;;  %v234_v46 = vld [vmem:[%s694_s2 + $0x38] sm:$0xff] }
  0xab   : > { %v239_v51 = vmul.f32 %v223_v40, %v215_v44  ;;  %v232_v40 = vld [vmem:[%s694_s2 + $0x28] sm:$0xff] }
  0xac   : > { %v248_v52 = vadd.f32 %v247_v49, %v246_v47  ;;  %v240_v53 = vmul.f32 %v224_v45, %v216_v48  ;;  %v207_v55 = vpop.xlane.xlu0 %206  ;;  %v233_v47 = vld [vmem:[%s694_s2 + $0x30] sm:$0xff] }
  0xad   : > { %v251_v56 = vsel %vm243_vm0, %v239_v51, 0.0  ;;  %v217_v57 = vmul.f32 0.00390625, %v207_v55  ;;  %v210_v59 = vpop.xlane.xlu1 %209 }
  0xae   : > { %v250_v60 = vadd.f32 %v249_v50, %v248_v52  ;;  %v218_v61 = vmul.f32 0.00390625, %v210_v59  ;;  %v253_v62 = vsel %vm243_vm0, %v240_v53, 0.0 }
  0xaf   : > { %v241_v63 = vmul.f32 %v225_v54, %v217_v57 }
  0xb0   : > { %v252_v3 = vadd.f32 %v251_v56, %v250_v60  ;;  %v242_v7 = vmul.f32 %v226_v58, %v218_v61 }
  0xb1   : > { %v255_v10 = vsel %vm243_vm0, %v241_v63, 0.0 }
  0xb2   : > { %v254_v11 = vadd.f32 %v253_v62, %v252_v3  ;;  %v257_v16 = vsel %vm243_vm0, %v242_v7, 0.0 }
  0xb4   : > { %v256_v17 = vadd.f32 %v255_v10, %v254_v11 }
  0xb6   : > { %v258_v22 = vadd.f32 %v257_v16, %v256_v17 }
  0xb8   : > { %v259_v23 = vrot.slane %v258_v22, 4 }
  0xba   : > { %v260_v24 = vadd.f32 %v259_v23, %v258_v22 }
  0xbc   : > { %v261_v25 = vrot.slane %v260_v24, 2 }
  0xbe   : > { %v262_v26 = vadd.f32 %v261_v25, %v260_v24 }
  0xc0   : > { %v263_v27 = vrot.slane %v262_v26, 1 }
  0xc2   : > { %v264_v28 = vadd.f32 %v263_v27, %v262_v26 }
  0xc4   : > { %v265_v31 = vmax.f32 %v264_v28, 0.0 }
  0xc6   : > { %v267_v34 = vmul.f32 %v265_v31, %v228_v29  ;;  %v266_v35 = vmul.f32 %v265_v31, %v227_v30  ;;  %v269_v38 = vmul.f32 %v265_v31, %v230_v32  ;;  %v268_v39 = vmul.f32 %v265_v31, %v229_v33 }
  0xc7   : > { %v271_v44 = vmul.f32 %v265_v31, %v232_v40  ;;  %v270_v45 = vmul.f32 %v265_v31, %v231_v41  ;;  %v273_v50 = vmul.f32 %v265_v31, %v234_v46  ;;  %v272_v51 = vmul.f32 %v265_v31, %v233_v47 }
  0xc8   : > { %v277_v36 = vsel %vm243_vm0, %v267_v34, 0.0  ;;  %v274_v37 = vsel %vm243_vm0, %v266_v35, 0.0  ;;  %v283_v42 = vsel %vm243_vm0, %v269_v38, 0.0  ;;  %v280_v43 = vsel %vm243_vm0, %v268_v39, 0.0 }
  0xc9   : > { %278 = vadd.xlane.f32.xlu1 %v277_v36  ;;  %275 = vadd.xlane.f32.xlu0 %v274_v37  ;;  %v289_v48 = vsel %vm243_vm0, %v271_v44, 0.0  ;;  %v286_v49 = vsel %vm243_vm0, %v270_v45, 0.0  ;;  %v295_v52 = vsel %vm243_vm0, %v273_v50, 0.0  ;;  %v292_v53 = vsel %vm243_vm0, %v272_v51, 0.0 }
  0xcd   : > { %284 = vadd.xlane.f32.xlu1 %v283_v42  ;;  %281 = vadd.xlane.f32.xlu0 %v280_v43 }
  0xd1   : > { %290 = vadd.xlane.f32.xlu1 %v289_v48  ;;  %287 = vadd.xlane.f32.xlu0 %v286_v49 }
  0xd5   : > { %296 = vadd.xlane.f32.xlu1 %v295_v52  ;;  %293 = vadd.xlane.f32.xlu0 %v292_v53 }
 0x156   : > { %v279_v54 = vpop.xlane.xlu1 %278  ;;  %v276_v55 = vpop.xlane.xlu0 %275 }
 0x157   : > { %v443_v56 = vmul.f32 -1.442695, %v279_v54  ;;  %v442_v57 = vmul.f32 -1.442695, %v276_v55 }
 0x159   : > { %462 = vpow2.f32 %v443_v56 }
 0x15a   : > { %464 = vpow2.f32 %v442_v57  ;;  %v285_v58 = vpop.xlane.xlu1 %284  ;;  %v282_v59 = vpop.xlane.xlu0 %281 }
 0x15b   : > { %v445_v60 = vmul.f32 -1.442695, %v285_v58  ;;  %v444_v61 = vmul.f32 -1.442695, %v282_v59 }
 0x15d   : > { %466 = vpow2.f32 %v445_v60 }
 0x15e   : > { %468 = vpow2.f32 %v444_v61  ;;  %v291_v62 = vpop.xlane.xlu1 %290  ;;  %v288_v63 = vpop.xlane.xlu0 %287 }
 0x15f   : > { %v447_v3 = vmul.f32 -1.442695, %v291_v62  ;;  %v446_v7 = vmul.f32 -1.442695, %v288_v63 }
 0x161   : > { %470 = vpow2.f32 %v447_v3 }
 0x162   : > { %472 = vpow2.f32 %v446_v7  ;;  %v297_v10 = vpop.xlane.xlu1 %296  ;;  %v294_v11 = vpop.xlane.xlu0 %293 }
 0x163   : > { %v463_v16 = vpop.eup %462  ;;  %v449_v17 = vmul.f32 -1.442695, %v297_v10  ;;  %v448_v24 = vmul.f32 -1.442695, %v294_v11 }
 0x164   : > { %v465_v22 = vpop.eup %464  ;;  %v323_v23 = vadd.f32 1.0, %v463_v16 }
 0x165   : > { %v322_v25 = vadd.f32 1.0, %v465_v22  ;;  %474 = vpow2.f32 %v449_v17 }
 0x166   : > { %476 = vrcp.f32 %v323_v23 }
 0x167   : > { %v467_v26 = vpop.eup %466  ;;  %478 = vrcp.f32 %v322_v25 }
 0x168   : > { %v469_v27 = vpop.eup %468  ;;  %v325_v28 = vadd.f32 1.0, %v467_v26  ;;  %480 = vpow2.f32 %v448_v24 }
 0x169   : > { %v324_v29 = vadd.f32 1.0, %v469_v27 }
 0x16a   : > { %482 = vrcp.f32 %v325_v28 }
 0x16b   : > { %v471_v30 = vpop.eup %470  ;;  %484 = vrcp.f32 %v324_v29 }
 0x16c   : > { %v473_v31 = vpop.eup %472  ;;  %v327_v32 = vadd.f32 1.0, %v471_v30 }
 0x16d   : > { %v326_v33 = vadd.f32 1.0, %v473_v31 }
 0x16e   : > { %486 = vrcp.f32 %v327_v32 }
 0x16f   : > { %v475_v34 = vpop.eup %474  ;;  %488 = vrcp.f32 %v326_v33 }
 0x170   : > { %v477_v35 = vpop.eup %476  ;;  %v329_v36 = vadd.f32 1.0, %v475_v34 }
 0x171   : > { %v479_v37 = vpop.eup %478  ;;  %v348_v38 = vmul.f32 %v477_v35, %v548_v5  ;;  %v349_v39 = vmul.f32 %v477_v35, %v550_v6 }
 0x172   : > { %v481_v40 = vpop.eup %480  ;;  %v346_v41 = vmul.f32 %v479_v37, %v538_v0  ;;  %v347_v42 = vmul.f32 %v479_v37, %v540_v1  ;;  %490 = vrcp.f32 %v329_v36 }
 0x173   : > { %364 = vst [vmem:[%s655_s28 + $0x10] sm:$0xff] %v348_v38  ;;  %365 = vst [vmem:[%s655_s28 + $0x18] sm:$0xff] %v349_v39  ;;  %v328_v43 = vadd.f32 1.0, %v481_v40 }
 0x174   : > { %v483_v44 = vpop.eup %482  ;;  %362 = vst [vmem:[%s655_s28] sm:$0xff] %v346_v41  ;;  %363 = vst [vmem:[%s655_s28 + $0x8] sm:$0xff] %v347_v42 }
 0x175   : > { %v485_v45 = vpop.eup %484  ;;  %v352_v5 = vmul.f32 %v483_v44, %v554_v8  ;;  %v353_v6 = vmul.f32 %v483_v44, %v556_v9  ;;  %492 = vrcp.f32 %v328_v43 }
 0x176   : > { %v350_v0 = vmul.f32 %v485_v45, %v542_v2  ;;  %v351_v1 = vmul.f32 %v485_v45, %v546_v4 }
 0x177   : > { %368 = vst [vmem:[%s655_s28 + $0x30] sm:$0xff] %v352_v5  ;;  %369 = vst [vmem:[%s655_s28 + $0x38] sm:$0xff] %v353_v6 }
 0x178   : > { %v487_v46 = vpop.eup %486  ;;  %366 = vst [vmem:[%s655_s28 + $0x20] sm:$0xff] %v350_v0  ;;  %367 = vst [vmem:[%s655_s28 + $0x28] sm:$0xff] %v351_v1 }
 0x179   : > { %v489_v47 = vpop.eup %488  ;;  %v356_v8 = vmul.f32 %v487_v46, %v566_v14  ;;  %v357_v9 = vmul.f32 %v487_v46, %v568_v15 }
 0x17a   : > { %v354_v48 = vmul.f32 %v489_v47, %v562_v12  ;;  %v355_v2 = vmul.f32 %v489_v47, %v564_v13 }
 0x17b   : > { %372 = vst [vmem:[%s655_s28 + $0x50] sm:$0xff] %v356_v8  ;;  %373 = vst [vmem:[%s655_s28 + $0x58] sm:$0xff] %v357_v9 }
 0x17c   : > { %v491_v4 = vpop.eup %490  ;;  %370 = vst [vmem:[%s655_s28 + $0x40] sm:$0xff] %v354_v48  ;;  %371 = vst [vmem:[%s655_s28 + $0x48] sm:$0xff] %v355_v2 }
 0x17d   : > { %v360_v49 = vmul.f32 %v491_v4, %v578_v20  ;;  %v361_v50 = vmul.f32 %v491_v4, %v580_v21 }
 0x17f   : > { %v493_v51 = vpop.eup %492  ;;  %376 = vst [vmem:[%s655_s28 + $0x70] sm:$0xff] %v360_v49  ;;  %377 = vst [vmem:[%s655_s28 + $0x78] sm:$0xff] %v361_v50 }
 0x180   : > { %v358_v14 = vmul.f32 %v493_v51, %v574_v18  ;;  %v359_v15 = vmul.f32 %v493_v51, %v576_v19 }
 0x182   : > { %374 = vst [vmem:[%s655_s28 + $0x60] sm:$0xff] %v358_v14  ;;  %375 = vst [vmem:[%s655_s28 + $0x68] sm:$0xff] %v359_v15 }
 0x183 PF: > { %s13_s12 = sadd.s32 1, %s500_s12  }
 0x184   : > { %p10_p4 = scmp.ge.s32.totalorder %s13_s12, 4  }
 0x186   :  { %12 = sbr.rel (!%p10_p4) target bundleno = 1 (0x1), region = 62 }

</bundles_post_ra>
